<compile_context>
chip_gen: v7x
topology: tpu7x:2x2x1
jax: 0.10.0
libtpu: 0.0.40
codegen_flags: <defaults>
</compile_context>

<pallas_src>
import functools

import jax
import jax.numpy as jnp
from jax.experimental import pallas as pl
from jax.experimental.pallas import tpu as pltpu

_LANE = 128
_SUBLANE = 8


def _round_up(n, m):
    return ((n + m - 1) // m) * m


def _pad2(a, rows, cols):
    r, c = a.shape
    return jnp.pad(a, ((0, rows - r), (0, cols - c)))


def _mlp_v_kernel(x_ref, w1_ref, b1_ref, w2_ref, b2_ref, w3_ref, b3_ref, o_ref):
    """Fused 3-layer MLP: relu(x@W1+b1) -> relu(.@W2+b2) -> .@W3+b3."""
    cdt = w1_ref.dtype  # MXU operand dtype (bf16 by default, f32 if requested)
    x = x_ref[...].astype(cdt)  # torch `.float()` / quant cast done on the tile (VPU filler)

    h1 = jnp.dot(x, w1_ref[...], preferred_element_type=jnp.float32) + b1_ref[...]
    h1 = jnp.maximum(h1, 0.0)

    h2 = jnp.dot(h1.astype(cdt), w2_ref[...], preferred_element_type=jnp.float32) + b2_ref[...]
    h2 = jnp.maximum(h2, 0.0)

    v = jnp.dot(h2.astype(cdt), w3_ref[...], preferred_element_type=jnp.float32) + b3_ref[...]
    o_ref[...] = v.astype(o_ref.dtype)


def prepare_params(raw, *, weight_dtype=jnp.bfloat16):
    """One-time padding + cast of raw params (hoisted out of the per-step forward path).

    K of layer 1 is padded to the 8-sublane grain only (x stays narrow), the hidden width
    to the 128-lane grain (full vregs / MXU tiles), the output width stays unpadded.
    """
    w1, b1, w2, b2, w3, b3 = (raw["w1"], raw["b1"], raw["w2"], raw["b2"], raw["w3"], raw["b3"])
    n_input, n_features = w1.shape
    n_output = w3.shape[1]

    d_in = _round_up(n_input, _SUBLANE)
    feat = _round_up(n_features, _LANE)

    return dict(
        w1=_pad2(w1, d_in, feat).astype(weight_dtype),
        w2=_pad2(w2, feat, feat).astype(weight_dtype),
        w3=_pad2(w3, feat, n_output).astype(weight_dtype),  # output width unpadded
        b1=_pad2(b1, 1, feat).astype(jnp.float32),
        b2=_pad2(b2, 1, feat).astype(jnp.float32),
        b3=b3.astype(jnp.float32),
        n_input=int(n_input),
        n_features=int(n_features),
        n_output=int(n_output),
    )


def critic_v_forward(state, prepared, *, tile_b=512):
    """state: [B, 1, n_input] or [B, n_input] (any float dtype); returns v: [B, n_output] f32.

    `prepared` comes from prepare_params(); it carries static python-int metadata, so keep
    this wrapper un-jitted (the pallas_call itself is compiled).
    """
    if state.ndim == 3 and state.shape[1] == 1:
        state = jnp.squeeze(state, axis=1)  # torch.squeeze(state, 1): wrapper glue

    n_input = prepared["n_input"]
    n_features = prepared["n_features"]
    n_output = prepared["n_output"]
    w1p, b1p = prepared["w1"], prepared["b1"]
    w2p, b2p = prepared["w2"], prepared["b2"]
    w3p, b3p = prepared["w3"], prepared["b3"]
    d_in = w1p.shape[0]

    B = state.shape[0]
    assert state.shape[1] == n_input, (state.shape, n_input)

    # Batch tiling: balanced cdiv split at the 8-sublane grain; when B > 8 force >= 2 grid
    # steps so the "parallel" axis can shard across v7x's two TensorCores.
    n_tiles = pl.cdiv(B, tile_b)
    if n_tiles == 1 and B > _SUBLANE:
        n_tiles = 2
    tb = _round_up(pl.cdiv(B, n_tiles), _SUBLANE)
    n_tiles = pl.cdiv(B, tb)
    b_pad = tb * n_tiles

    # x keeps its native dtype (cast happens in-kernel) and its true feature width
    # (padded only to the 8 grain if needed); zero padding is exact.
    x = state
    if b_pad != B or d_in != n_input:
        x = jnp.pad(x, ((0, b_pad - B), (0, d_in - n_input)))

    # Advisory cost from the true (unpadded) dims / actual storage dtypes.
    w_bytes = (w1p.size + w2p.size + w3p.size) * w1p.dtype.itemsize
    b_bytes = (b1p.size + b2p.size + b3p.size) * 4
    flops = 2 * B * (n_input * n_features + n_features * n_features + n_features * n_output)
    bytes_accessed = (B * n_input * state.dtype.itemsize + w_bytes + b_bytes
                      + B * n_output * 4)
    cost = pl.CostEstimate(flops=flops, transcendentals=0, bytes_accessed=bytes_accessed)

    # Resident weights/biases get double-buffered by the auto-pipeliner even though their
    # block never changes; only raise the scoped-VMEM limit when that footprint would not
    # fit v5e's 16 MiB default (bf16 storage keeps realistic widths well under it).
    io_bytes = tb * d_in * x.dtype.itemsize + tb * n_output * 4
    vmem_need = 2 * (w_bytes + b_bytes + io_bytes) + (2 << 20)
    vmem_limit = min(int(vmem_need), 100 * 1024 * 1024) if vmem_need > 14 * 1024 * 1024 else None

    resident = lambda a: pl.BlockSpec(a.shape, lambda i: (0, 0))  # stays in VMEM across tiles

    out = pl.pallas_call(
        _mlp_v_kernel,
        out_shape=jax.ShapeDtypeStruct((b_pad, n_output), jnp.float32),
        grid=(n_tiles,),
        in_specs=[
            pl.BlockSpec((tb, d_in), lambda i: (i, 0)),  # x: tiled over batch
            resident(w1p), resident(b1p),
            resident(w2p), resident(b2p),
            resident(w3p), resident(b3p),
        ],
        out_specs=pl.BlockSpec((tb, n_output), lambda i: (i, 0)),  # unpadded, sliced-free output
        compiler_params=pltpu.CompilerParams(
            dimension_semantics=("parallel",),
            vmem_limit_bytes=vmem_limit,
        ),
        cost_estimate=cost,
    )(x, w1p, b1p, w2p, b2p, w3p, b3p)

    return out[:B] if b_pad != B else out


def _xavier_uniform(key, shape_out_in, gain):
    """Matches nn.init.xavier_uniform_ on a torch Linear weight [out, in]."""
    fan_out, fan_in = shape_out_in
    a = gain * jnp.sqrt(6.0 / (fan_in + fan_out))
    return jax.random.uniform(key, shape_out_in, jnp.float32, minval=-a, maxval=a)


def _torch_linear_bias(key, fan_in, n_out):
    """PyTorch default Linear bias init: U(-1/sqrt(fan_in), +1/sqrt(fan_in))."""
    bound = 1.0 / jnp.sqrt(jnp.float32(fan_in))
    return jax.random.uniform(key, (1, n_out), jnp.float32, minval=-bound, maxval=bound)


def init_params(key, n_input, n_features, n_output, activation="relu"):
    gain_act = jnp.sqrt(2.0) if activation == "relu" else (5.0 / 3.0)  # relu / tanh gains
    gain_lin = 1.0
    k1, k2, k3, kb1, kb2, kb3 = jax.random.split(key, 6)
    # torch Linear weight is [out, in]; store transposed [in, out] for the kernel.
    w1 = _xavier_uniform(k1, (n_features, n_input), gain_act).T
    w2 = _xavier_uniform(k2, (n_features, n_features), gain_act).T
    w3 = _xavier_uniform(k3, (n_output, n_features), gain_lin).T
    b1 = _torch_linear_bias(kb1, n_input, n_features)
    b2 = _torch_linear_bias(kb2, n_features, n_features)
    b3 = _torch_linear_bias(kb3, n_features, n_output)
    return dict(w1=w1, b1=b1, w2=w2, b2=b2, w3=w3, b3=b3)


def _reference(state, raw, operand_dtype=jnp.float32):
    """Pure-JAX reference; operand_dtype mirrors the kernel's MXU operand dtype."""
    x = jnp.squeeze(state, axis=1).astype(jnp.float32).astype(operand_dtype)
    dot = functools.partial(jnp.dot, preferred_element_type=jnp.float32)
    w1 = raw["w1"].astype(operand_dtype)
    w2 = raw["w2"].astype(operand_dtype)
    w3 = raw["w3"].astype(operand_dtype)
    h1 = jnp.maximum(dot(x, w1) + raw["b1"], 0.0)
    h2 = jnp.maximum(dot(h1.astype(operand_dtype), w2) + raw["b2"], 0.0)
    return dot(h2.astype(operand_dtype), w3) + raw["b3"]


if __name__ == "__main__":
    key = jax.random.PRNGKey(0)
    k_state, k_params = jax.random.split(key)

    B, n_input, n_features, n_output = 8, 16, 32, 1
    # state mimics the torch usage: an extra singleton dim that forward squeezes.
    state = jax.random.normal(k_state, (B, 1, n_input), dtype=jnp.float32)
    raw = init_params(k_params, n_input, n_features, n_output, activation="relu")

    # Default path: bf16-stored weights, f32 accumulation on the MXU.
    prepared_bf16 = prepare_params(raw, weight_dtype=jnp.bfloat16)
    v_bf16 = jax.block_until_ready(critic_v_forward(state, prepared_bf16))
    assert v_bf16.shape == (B, n_output), v_bf16.shape
    ref_bf16 = _reference(state, raw, operand_dtype=jnp.bfloat16)
    assert jnp.allclose(v_bf16, ref_bf16, atol=1e-4, rtol=1e-4), "bf16 path mismatch"
    ref_f32 = _reference(state, raw, operand_dtype=jnp.float32)
    assert jnp.allclose(v_bf16, ref_f32, atol=5e-2, rtol=5e-2), "bf16 path far from f32 reference"

    # Exact-parity path: f32-stored weights (bit-level parity with the torch f32 forward).
    prepared_f32 = prepare_params(raw, weight_dtype=jnp.float32)
    v_f32 = jax.block_until_ready(critic_v_forward(state, prepared_f32))
    assert v_f32.shape == (B, n_output), v_f32.shape
    assert jnp.allclose(v_f32, ref_f32, atol=1e-5, rtol=1e-5), "f32 path mismatch"

    print("KERNEL_OK")
</pallas_src>

<mosaic_0001>
module attributes {stable_mosaic.version = 11 : i64} {
  func.func @_mlp_v_kernel(%arg0: i32, %arg1: memref<8x16xf32, #tpu.memory_space<vmem>>, %arg2: memref<16x128xbf16, #tpu.memory_space<vmem>>, %arg3: memref<1x128xf32, #tpu.memory_space<vmem>>, %arg4: memref<128x128xbf16, #tpu.memory_space<vmem>>, %arg5: memref<1x128xf32, #tpu.memory_space<vmem>>, %arg6: memref<128x1xbf16, #tpu.memory_space<vmem>>, %arg7: memref<1x1xf32, #tpu.memory_space<vmem>>, %arg8: memref<8x1xf32, #tpu.memory_space<vmem>>) attributes {dimension_semantics = [#tpu.dimension_semantics<parallel>], iteration_bounds = array<i64: 1>, scalar_prefetch = 0 : i64, scratch_operands = 0 : i64, tpu.core_type = #tpu.core_type<tc>, window_params = [{transform_indices = @transform_0, window_bounds = array<i64: 8, 16>}, {pipeline_mode = #tpu.pipeline_mode<synchronous>, transform_indices = @transform_1, window_bounds = array<i64: 16, 128>}, {pipeline_mode = #tpu.pipeline_mode<synchronous>, transform_indices = @transform_2, window_bounds = array<i64: 1, 128>}, {pipeline_mode = #tpu.pipeline_mode<synchronous>, transform_indices = @transform_3, window_bounds = array<i64: 128, 128>}, {pipeline_mode = #tpu.pipeline_mode<synchronous>, transform_indices = @transform_4, window_bounds = array<i64: 1, 128>}, {pipeline_mode = #tpu.pipeline_mode<synchronous>, transform_indices = @transform_5, window_bounds = array<i64: 128, 1>}, {pipeline_mode = #tpu.pipeline_mode<synchronous>, transform_indices = @transform_6, window_bounds = array<i64: 1, 1>}, {transform_indices = @transform_7, window_bounds = array<i64: 8, 1>}]} {
    %c0 = arith.constant 0 : index
    %c0_0 = arith.constant 0 : index
    %0 = vector.load %arg1[%c0, %c0_0] : memref<8x16xf32, #tpu.memory_space<vmem>>, vector<8x16xf32>
    %1 = arith.truncf %0 : vector<8x16xf32> to vector<8x16xbf16>
    %c0_1 = arith.constant 0 : index
    %c0_2 = arith.constant 0 : index
    %2 = vector.load %arg2[%c0_1, %c0_2] : memref<16x128xbf16, #tpu.memory_space<vmem>>, vector<16x128xbf16>
    %cst = arith.constant dense<0.000000e+00> : vector<8x128xf32>
    %3 = tpu.matmul %1, %2, %cst {dimension_numbers = #tpu.dot_dimension_numbers<[1], [0], [0], [1], [0, 0, 1, 1], [], []>} : vector<8x16xbf16>, vector<16x128xbf16>, vector<8x128xf32> -> vector<8x128xf32>
    %c0_3 = arith.constant 0 : index
    %c0_4 = arith.constant 0 : index
    %4 = vector.load %arg3[%c0_3, %c0_4] : memref<1x128xf32, #tpu.memory_space<vmem>>, vector<1x128xf32>
    %5 = vector.broadcast %4 : vector<1x128xf32> to vector<8x128xf32>
    %6 = arith.addf %3, %5 : vector<8x128xf32>
    %cst_5 = arith.constant 0.000000e+00 : f32
    %7 = vector.broadcast %cst_5 : f32 to vector<8x128xf32>
    %8 = arith.maximumf %6, %7 : vector<8x128xf32>
    %9 = arith.truncf %8 : vector<8x128xf32> to vector<8x128xbf16>
    %c0_6 = arith.constant 0 : index
    %c0_7 = arith.constant 0 : index
    %10 = vector.load %arg4[%c0_6, %c0_7] : memref<128x128xbf16, #tpu.memory_space<vmem>>, vector<128x128xbf16>
    %cst_8 = arith.constant dense<0.000000e+00> : vector<8x128xf32>
    %11 = tpu.matmul %9, %10, %cst_8 {dimension_numbers = #tpu.dot_dimension_numbers<[1], [0], [0], [1], [0, 0, 1, 1], [], []>} : vector<8x128xbf16>, vector<128x128xbf16>, vector<8x128xf32> -> vector<8x128xf32>
    %c0_9 = arith.constant 0 : index
    %c0_10 = arith.constant 0 : index
    %12 = vector.load %arg5[%c0_9, %c0_10] : memref<1x128xf32, #tpu.memory_space<vmem>>, vector<1x128xf32>
    %13 = vector.broadcast %12 : vector<1x128xf32> to vector<8x128xf32>
    %14 = arith.addf %11, %13 : vector<8x128xf32>
    %cst_11 = arith.constant 0.000000e+00 : f32
    %15 = vector.broadcast %cst_11 : f32 to vector<8x128xf32>
    %16 = arith.maximumf %14, %15 : vector<8x128xf32>
    %17 = arith.truncf %16 : vector<8x128xf32> to vector<8x128xbf16>
    %c0_12 = arith.constant 0 : index
    %c0_13 = arith.constant 0 : index
    %18 = vector.load %arg6[%c0_12, %c0_13] : memref<128x1xbf16, #tpu.memory_space<vmem>>, vector<128x1xbf16>
    %cst_14 = arith.constant dense<0.000000e+00> : vector<8x1xf32>
    %19 = tpu.matmul %17, %18, %cst_14 {dimension_numbers = #tpu.dot_dimension_numbers<[1], [0], [0], [1], [0, 0, 1, 1], [], []>} : vector<8x128xbf16>, vector<128x1xbf16>, vector<8x1xf32> -> vector<8x1xf32>
    %c0_15 = arith.constant 0 : index
    %c0_16 = arith.constant 0 : index
    %20 = vector.load %arg7[%c0_15, %c0_16] : memref<1x1xf32, #tpu.memory_space<vmem>>, vector<1x1xf32>
    %21 = vector.broadcast %20 : vector<1x1xf32> to vector<8x1xf32>
    %22 = arith.addf %19, %21 : vector<8x1xf32>
    %c0_17 = arith.constant 0 : index
    %c0_18 = arith.constant 0 : index
    %23 = vector.load %arg8[%c0_17, %c0_18] : memref<8x1xf32, #tpu.memory_space<vmem>>, vector<8x1xf32>
    tpu.vector_store %arg8[%c0_17, %c0_18], %22 {strides = array<i32>} : memref<8x1xf32, #tpu.memory_space<vmem>>, vector<8x1xf32>,
    return
  }
  func.func @transform_0(%arg0: i32) -> (i32, i32) {
    %c0_i32 = arith.constant 0 : i32
    %c0_i32_0 = arith.constant 0 : i32
    return %arg0, %c0_i32 : i32, i32
  }
  func.func @transform_1(%arg0: i32) -> (i32, i32) {
    %c0_i32 = arith.constant 0 : i32
    %c0_i32_0 = arith.constant 0 : i32
    %c0_i32_1 = arith.constant 0 : i32
    return %c0_i32, %c0_i32_0 : i32, i32
  }
  func.func @transform_2(%arg0: i32) -> (i32, i32) {
    %c0_i32 = arith.constant 0 : i32
    %c0_i32_0 = arith.constant 0 : i32
    %c0_i32_1 = arith.constant 0 : i32
    return %c0_i32, %c0_i32_0 : i32, i32
  }
  func.func @transform_3(%arg0: i32) -> (i32, i32) {
    %c0_i32 = arith.constant 0 : i32
    %c0_i32_0 = arith.constant 0 : i32
    %c0_i32_1 = arith.constant 0 : i32
    return %c0_i32, %c0_i32_0 : i32, i32
  }
  func.func @transform_4(%arg0: i32) -> (i32, i32) {
    %c0_i32 = arith.constant 0 : i32
    %c0_i32_0 = arith.constant 0 : i32
    %c0_i32_1 = arith.constant 0 : i32
    return %c0_i32, %c0_i32_0 : i32, i32
  }
  func.func @transform_5(%arg0: i32) -> (i32, i32) {
    %c0_i32 = arith.constant 0 : i32
    %c0_i32_0 = arith.constant 0 : i32
    %c0_i32_1 = arith.constant 0 : i32
    return %c0_i32, %c0_i32_0 : i32, i32
  }
  func.func @transform_6(%arg0: i32) -> (i32, i32) {
    %c0_i32 = arith.constant 0 : i32
    %c0_i32_0 = arith.constant 0 : i32
    %c0_i32_1 = arith.constant 0 : i32
    return %c0_i32, %c0_i32_0 : i32, i32
  }
  func.func @transform_7(%arg0: i32) -> (i32, i32) {
    %c0_i32 = arith.constant 0 : i32
    %c0_i32_0 = arith.constant 0 : i32
    return %arg0, %c0_i32 : i32, i32
  }
}

</mosaic_0001>

<bundles_post_ra>
// kernel: tpu_custom_call.1
= control target key start
LH: loop header
LB: loop body
LE: loop exit
PB: predicated region body
PF: predicated region fallthrough
CT: control target
= control target key end

     0   :  { %s604_s0 = inlined_call_operand.vmem [shape: f32[8,16], index: 0, kind: input, shape index: {}]   ;;  %s605_s1 = inlined_call_operand.vmem [shape: bf16[16,128], index: 1, kind: input, shape index: {}]   ;;  %s606_s2 = inlined_call_operand.hbm [shape: f32[1,128], index: 2, kind: input, shape index: {}]   ;;  %s607_s3 = inlined_call_operand.vmem [shape: bf16[128,128], index: 3, kind: input, shape index: {}]   ;;  %s608_s4 = inlined_call_operand.vmem [shape: f32[1,128], index: 4, kind: input, shape index: {}]   ;;  %s609_s5 = inlined_call_operand.vmem [shape: bf16[128,1], index: 5, kind: input, shape index: {}]   ;;  %s610_s6 = inlined_call_operand.<no memory space> [shape: f32[1,1], index: 6, kind: input, shape index: {}]   ;;  %s611_s7 = inlined_call_operand.vmem [shape: f32[8,1], index: 7, kind: output, shape index: {}]  }
   0x1   :  { %v12_v0 = vstv %s610_s6 }
   0x2   :  { %13 = vst [vmem:[#allocation2] sm:$0x1] %v12_v0 }
   0x3   :  { %14 = vsyncpa [#allocation4], 0  ;;  %s466_s26 = smov [#allocation3]   ;;  %s442_s30 = scalar_lea.hbm %s606_s2, 16 }
   0x4   :  { %s25_s27 = sshll.u32 %s466_s26, 4  ;;  %p443_p0 = scmp.ne.s32.totalorder %s606_s2, %s442_s30  ;;  %s26_s27 = int_to_ptr.vmem [resolvable:$true] %s25_s27 }
   0x5   :  { %p446_p1 = scmp.lt.u32.totalorder %s442_s30, %s606_s2 }
   0x7   :  { %p448_p2 = pnand %p446_p1, %p443_p0 }
   0x9   :  { %451 = shalt.err (!%p448_p2)
}
   0xa   :  { %s452_s6 = scalar_lea.vmem %s26_s27, 16  ;;  %s456_s12 = scalar_lea.vmem %s26_s27, 32 }
   0xb   :  { %p453_p3 = scmp.ne.s32.totalorder %s26_s27, %s452_s6  ;;  %p457_p4 = scmp.lt.s32.totalorder %s26_s27, %s26_s27 }
   0xc   :  { %p458_p5 = scmp.lt.s32.totalorder %s456_s12, %s452_s6 }
   0xe   :  { %p459_p6 = por %p458_p5, %p457_p4 }
  0x10   :  { %p460_p7 = pnand %p459_p6, %p453_p3 }
  0x12   :  { %463 = shalt.err (!%p460_p7)
}
  0x13   :  { %28 = dma.hbm_to_vmem [thread:$0]  %s606_s2, 16, %s26_s27, [#allocation4]  }
  0x14   :  { %464 = dma.done.wait [#allocation4], 16  }
  0x15   :  { %465 = vsyncadd [#allocation4], 4294967280  ;;  %v467_v1 = vmov 0.0   ;;  %vm468_vm0 = vmmov 0   ;;  %v425_v2 = vld [vmem:[%s605_s1] sm:$0xff]   ;;  %vm58_vm1 = vcmask 130048  }
  0x16   :  { %376 = vmatprep.subr.bf16.mxu0 %v467_v1  ;;  %378 = vmatprep.mubr.msk.bf16.mxu0 %vm468_vm0, %v467_v1  ;;  %v41_v3 = vld [vmem:[%s604_s0] sm:$0xff]  ;;  %v427_v6 = vld [vmem:[%s607_s3 + $0x8] sm:$0xff]   ;;  %v428_v7 = vld [vmem:[%s607_s3 + $0x10] sm:$0xff]   ;;  %vm328_vm2 = vcmask 7168  }
  0x17   :  { %382 = vmatprep.subr.bf16.mxu1 %v467_v1  ;;  %398 = vmatprep.mubr.msk.bf16.mxu1 %vm468_vm0, %v467_v1  ;;  %v42_v4 = vpack.c.bf16 %v41_v3, %v41_v3  ;;  %v426_v5 = vld [vmem:[%s607_s3] sm:$0xff]   ;;  %v429_v8 = vld [vmem:[%s607_s3 + $0x18] sm:$0xff]   ;;  %v431_v10 = vld [vmem:[%s607_s3 + $0x28] sm:$0xff]  }
  0x18   :  { %377 = vmatpush3.bf16.msra.mxu0 %v425_v2  ;;  %383 = vmatpush3.bf16.msra.mxu1 %v426_v5  ;;  %v430_v9 = vld [vmem:[%s607_s3 + $0x20] sm:$0xff]   ;;  %v432_v11 = vld [vmem:[%s607_s3 + $0x30] sm:$0xff]   ;;  %v433_v12 = vld [vmem:[%s607_s3 + $0x38] sm:$0xff]  }
  0x19   :  { %402 = vmatprep.subr.bf16.mxu0 %v467_v1  ;;  %384 = vmatprep.subr.bf16.mxu1 %v467_v1  ;;  %v434_v13 = vld [vmem:[%s609_s5] sm:$0xff]   ;;  %v435_v14 = vld [vmem:[%s609_s5 + $0x8] sm:$0xff]   ;;  %v436_v15 = vld [vmem:[%s609_s5 + $0x10] sm:$0xff]  }
  0x1a   :  { %v437_v16 = vld [vmem:[%s609_s5 + $0x18] sm:$0xff]   ;;  %v438_v17 = vld [vmem:[%s609_s5 + $0x20] sm:$0xff]   ;;  %v439_v18 = vld [vmem:[%s609_s5 + $0x28] sm:$0xff]  }
  0x1b   :  { %379 = vmatmul.mubr.msk.bf16.vlgmr.msra.gmra.mrb[0].mxu0 %vm58_vm1, %v42_v4  ;;  %v335_v19 = vld [vmem:[#allocation3] ss:$0 sm:$0xff]  ;;  %v440_v27 = vld [vmem:[%s609_s5 + $0x30] sm:$0xff]   ;;  %v441_v28 = vld [vmem:[%s609_s5 + $0x38] sm:$0xff]  }
  0x1c   :  { %418 = vmatprep.mubr.msk.bf16.mxu0 %vm468_vm0, %v467_v1  ;;  %385 = vmatpush3.bf16.msra.mxu1 %v427_v6  ;;  %v338_v29 = vld [vmem:[%s608_s4] ss:$0 sm:$0xff] }
  0x1d   :  { %386 = vmatprep.subr.bf16.mxu1 %v467_v1  ;;  %403 = vmatpush3.bf16.msra.mxu0 %v434_v13  ;;  %v347_v37 = vld [vmem:[#allocation2] ss:$0 sm:$0xff] }
  0x1e   :  { %404 = vmatprep.subr.bf16.mxu0 %v467_v1 }
  0x20   :  { %387 = vmatpush3.bf16.msra.mxu1 %v428_v7 }
  0x21   :  { %388 = vmatprep.subr.bf16.mxu1 %v467_v1  ;;  %405 = vmatpush3.bf16.msra.mxu0 %v435_v14 }
  0x22   :  { %406 = vmatprep.subr.bf16.mxu0 %v467_v1 }
  0x24   :  { %389 = vmatpush3.bf16.msra.mxu1 %v429_v8 }
  0x25   :  { %390 = vmatprep.subr.bf16.mxu1 %v467_v1  ;;  %407 = vmatpush3.bf16.msra.mxu0 %v436_v15 }
  0x26   :  { %408 = vmatprep.subr.bf16.mxu0 %v467_v1 }
  0x28   :  { %391 = vmatpush3.bf16.msra.mxu1 %v430_v9 }
  0x29   :  { %392 = vmatprep.subr.bf16.mxu1 %v467_v1  ;;  %409 = vmatpush3.bf16.msra.mxu0 %v437_v16 }
  0x2a   :  { %410 = vmatprep.subr.bf16.mxu0 %v467_v1 }
  0x2c   :  { %393 = vmatpush3.bf16.msra.mxu1 %v431_v10 }
  0x2d   :  { %394 = vmatprep.subr.bf16.mxu1 %v467_v1  ;;  %411 = vmatpush3.bf16.msra.mxu0 %v438_v17 }
  0x2e   :  { %412 = vmatprep.subr.bf16.mxu0 %v467_v1 }
  0x30   :  { %395 = vmatpush3.bf16.msra.mxu1 %v432_v11 }
  0x31   :  { %396 = vmatprep.subr.bf16.mxu1 %v467_v1  ;;  %413 = vmatpush3.bf16.msra.mxu0 %v439_v18 }
  0x32   :  { %414 = vmatprep.subr.bf16.mxu0 %v467_v1 }
  0x34   :  { %397 = vmatpush3.bf16.msra.mxu1 %v433_v12 }
  0x35   :  { %415 = vmatpush3.bf16.msra.mxu0 %v440_v27 }
  0x36   :  { %416 = vmatprep.subr.bf16.mxu0 %v467_v1 }
  0x39   :  { %417 = vmatpush3.bf16.msra.mxu0 %v441_v28 }
  0xee   :  { %v96_v20 = vpop.f32.mrb[0].mxu0 }
  0xef   :  { %v97_v21 = vadd.f32 %v335_v19, %v96_v20  ;;  %v380_v22 = vpop.f32.mrb[1].mxu0 }
  0xf0   :  { %v99_v23 = vpop.f32.mrb[2].mxu0 }
  0xf1   :  { %v102_v24 = vmax.f32 %v97_v21, 0.0  ;;  %v381_v25 = vpop.f32.mrb[3].mxu0 }
  0xf3   :  { %v103_v26 = vpack.c.bf16 %v102_v24, %v102_v24 }
  0xf5   :  { %399 = vmatmul.mubr.bf16.vlgmr.msra.gmra.mrb[0].mxu1 %v103_v26 }
 0x1c8   :  { %v209_v30 = vpop.f32.mrb[0].mxu1 }
 0x1c9   :  { %v210_v31 = vadd.f32 %v338_v29, %v209_v30  ;;  %v400_v32 = vpop.f32.mrb[1].mxu1 }
 0x1ca   :  { %v212_v33 = vpop.f32.mrb[2].mxu1 }
 0x1cb   :  { %v215_v34 = vmax.f32 %v210_v31, 0.0  ;;  %v401_v35 = vpop.f32.mrb[3].mxu1 }
 0x1cd   :  { %v216_v36 = vpack.c.bf16 %v215_v34, %v215_v34 }
 0x1cf   :  { %419 = vmatmul.mubr.bf16.vlgmr.msra.gmra.mrb[4].mxu0 %v216_v36 }
 0x2a2   :  { %v322_v38 = vpop.f32.mrb[4].mxu0 }
 0x2a3   :  { %v323_v39 = vadd.f32 %v347_v37, %v322_v38  ;;  %v420_v40 = vpop.f32.mrb[5].mxu0 }
 0x2a4   :  { %v325_v41 = vpop.f32.mrb[6].mxu0 }
 0x2a5   :  { %329 = vst.msk [vmem:[%s611_s7] sm:$0xff] %vm328_vm2, %v323_v39  ;;  %v421_v42 = vpop.f32.mrb[7].mxu0 }
 0x2a6   :  { %334 = vsyncpa [#allocation4], 1 }

</bundles_post_ra>
